<compile_context>
chip_gen: v7x
topology: tpu7x:2x2x1
jax: 0.10.0
libtpu: 0.0.40
codegen_flags: <defaults>
</compile_context>

<pallas_src>
import functools

import jax
import jax.numpy as jnp
from jax import lax
from jax.experimental import pallas as pl
from jax.experimental.pallas import tpu as pltpu


def _soc_batch_kernel(m_ref, rr_ref, fs_ref, y_ref, loss_ref, ihat_ref, a_ref, *, L):
    m = m_ref[...]      # (TB, K)  raw mass fractions (last col = SOC slot)
    rr = rr_ref[...]    # (TB, K)  rho*radius per endmember (incl. SOC)
    fs = fs_ref[...]    # (K, Lp)  endmember spectra (zero-padded past L)
    y = y_ref[...]      # (TB, Lp) observed spectra (zero-padded past L)

    # mFull = ms / sum(ms)  (needed only for the out-of-bounds penalty).
    m_full = m * pl.reciprocal(jnp.sum(m, axis=-1, keepdims=True), approx=False)

    # A = (mFull/rrFull)/sum(mFull/rrFull) == (m/rr)/sum(m/rr): sum(m) cancels.
    t = m / rr
    a = t * pl.reciprocal(jnp.sum(t, axis=-1, keepdims=True), approx=False)

    # Ihat = A @ fs  (MXU, f32 accumulation). Padded fs columns are zero.
    ihat = jnp.dot(a, fs, preferred_element_type=jnp.float32)   # (TB, Lp)

    # Out-of-bounds abundance penalty: both terms fused into one lane reduction.
    low = jnp.where(m_full < 0.001, (m_full - 0.001) ** 2, 0.0)
    high = jnp.where(m_full > 0.999, (m_full + 0.001 - 1.0) ** 2, 0.0)
    oobs = jnp.sum(low + high, axis=-1, keepdims=True)           # (TB, 1)

    # Smoothness penalties: roll-by-(Lp-1) along lanes gives x[(i+1) mod Lp],
    # masked to the true spectral length (full-width vregs, no odd slices).
    Lp = ihat.shape[-1]
    lane = lax.broadcasted_iota(jnp.int32, ihat.shape, 1)
    d1 = jnp.where(lane < L - 1, pltpu.roll(ihat, shift=Lp - 1, axis=1) - ihat, 0.0)
    d2 = jnp.where(lane < L - 2, pltpu.roll(d1, shift=Lp - 1, axis=1) - d1, 0.0)
    r = jnp.where(lane < L, y - ihat, 0.0)

    diffloss = jnp.sum(d1 * d1 + d2 * d2, axis=-1, keepdims=True)  # one reduction
    lsq = jnp.sum(r * r, axis=-1, keepdims=True)

    loss_ref[...] = lsq * (1.0 + 100.0 * diffloss + 100.0 * oobs)
    ihat_ref[...] = ihat
    a_ref[...] = a


def soc_predictor_forward_batch(ms, rhorad, rrsoc, fs, y, *, batch_tile=8):
    """Batched forward pass of LinearMixingSOCPredictor.

    ms:     (B, K)   raw mass-fraction parameters (incl. SOC slot, last column)
    rhorad: (K-1,)   fixed rho*radius for the non-SOC endmembers (shared)
    rrsoc:  (B,)     learnable rho*radius for SOC, per sample
    fs:     (K, L)   endmember reflectance spectra (shared)
    y:      (B, L)   observed spectra
    returns (loss: (B,), Ihat: (B, L), A: (B, K))
    """
    ms = jnp.asarray(ms, jnp.float32)
    rhorad = jnp.asarray(rhorad, jnp.float32)
    rrsoc = jnp.asarray(rrsoc, jnp.float32)
    fs = jnp.asarray(fs, jnp.float32)
    y = jnp.asarray(y, jnp.float32)

    B, K = ms.shape
    L = fs.shape[1]

    # rrFull per sample: [rhorad..., rrsoc_b]  (parameter assembly in plain JAX).
    rr = jnp.concatenate(
        [jnp.broadcast_to(rhorad[None, :], (B, K - 1)), rrsoc[:, None]], axis=1)

    # Pad batch to a multiple of the 8-row (f32 sublane) tile, spectral axis to
    # a multiple of 128 lanes (lane-dense, unmasked Ihat stores).
    TB = batch_tile
    Bp = ((B + TB - 1) // TB) * TB
    Lp = ((L + 127) // 128) * 128

    m_p = jnp.pad(ms, ((0, Bp - B), (0, 0)), constant_values=1.0)   # keep sums nonzero
    rr_p = jnp.pad(rr, ((0, Bp - B), (0, 0)), constant_values=1.0)
    fs_p = jnp.pad(fs, ((0, 0), (0, Lp - L)))
    y_p = jnp.pad(y, ((0, Bp - B), (0, Lp - L)))

    kernel = functools.partial(_soc_batch_kernel, L=L)

    loss, ihat, a = pl.pallas_call(
        kernel,
        out_shape=(
            jax.ShapeDtypeStruct((Bp, 1), jnp.float32),    # per-sample loss
            jax.ShapeDtypeStruct((Bp, Lp), jnp.float32),   # Ihat (lane-padded)
            jax.ShapeDtypeStruct((Bp, K), jnp.float32),    # A (residual for VJP)
        ),
        grid=(Bp // TB,),
        in_specs=[
            pl.BlockSpec((TB, K), lambda i: (i, 0)),       # ms tile
            pl.BlockSpec((TB, K), lambda i: (i, 0)),       # rrFull tile
            pl.BlockSpec((K, Lp), lambda i: (0, 0)),       # fs: resident across grid
            pl.BlockSpec((TB, Lp), lambda i: (i, 0)),      # y tile
        ],
        out_specs=(
            pl.BlockSpec((TB, 1), lambda i: (i, 0)),
            pl.BlockSpec((TB, Lp), lambda i: (i, 0)),
            pl.BlockSpec((TB, K), lambda i: (i, 0)),
        ),
        compiler_params=pltpu.CompilerParams(
            dimension_semantics=("parallel",)),            # megacore on v7x
    )(m_p, rr_p, fs_p, y_p)

    return loss[:B, 0], ihat[:B, :L], a[:B]


def soc_predictor_forward(ms, rhorad, rrsoc, fs, y):
    """Single-sample forward matching the PyTorch module signature."""
    loss, ihat, _ = soc_predictor_forward_batch(
        jnp.asarray(ms)[None, :], rhorad, jnp.reshape(jnp.asarray(rrsoc), (1,)),
        fs, jnp.asarray(y)[None, :])
    # TODO(synk): epoch-indexed numpy logging buffers (lsq/loss/socbias/bdsALoss/
    # diffloss) and .detach().item() side effects have no Pallas equivalent.
    return loss[0], ihat[0]


def _reference_forward_batch(ms, rhorad, rrsoc, fs, y):
    """Pure-JAX batched reference mirroring the PyTorch forward row-wise."""
    ms = ms.astype(jnp.float32)
    fs = fs.astype(jnp.float32)
    y = y.astype(jnp.float32)
    B, K = ms.shape
    rr = jnp.concatenate(
        [jnp.broadcast_to(rhorad.astype(jnp.float32)[None, :], (B, K - 1)),
         rrsoc.astype(jnp.float32)[:, None]], axis=1)
    m_full = ms / jnp.sum(ms, axis=1, keepdims=True)
    t = m_full / rr
    a = t / jnp.sum(t, axis=1, keepdims=True)
    ihat = a @ fs
    oobs = jnp.sum((m_full < 0.001).astype(jnp.float32) * (m_full - 0.001) ** 2, axis=1)
    oobs += jnp.sum((m_full > 0.999).astype(jnp.float32) * (m_full + 0.001 - 1.0) ** 2, axis=1)
    d1 = jnp.diff(ihat, axis=1)
    d2 = jnp.diff(d1, axis=1)
    diffloss = jnp.sum(d1 ** 2, axis=1) + jnp.sum(d2 ** 2, axis=1)
    lsq = jnp.sum((y - ihat) ** 2, axis=1)
    loss = lsq * (1.0 + 100.0 * diffloss + 100.0 * oobs)
    return loss, ihat, a


if __name__ == "__main__":
    # Small shapes consistent with the module (batch of independent SOC fits):
    # B samples, K endmembers (last slot = SOC), L spectral bands.
    # Deliberately non-aligned (B=12, K=24, L=300) to exercise padding/masking.
    B, K, L = 12, 24, 300
    key = jax.random.PRNGKey(0)
    k_ms, k_rr, k_soc, k_fs, k_y = jax.random.split(key, 5)

    ms = jax.random.uniform(k_ms, (B, K), jnp.float32, 0.01, 1.0)        # seedMs
    rhorad = jax.random.uniform(k_rr, (K - 1,), jnp.float32, 0.5, 2.0)   # rho*rad
    rrsoc = jax.random.uniform(k_soc, (B,), jnp.float32, 0.5, 2.0)       # seedrrsoc
    fs = jax.random.uniform(k_fs, (K, L), jnp.float32, 0.0, 1.0)         # seedFs
    y = jax.random.uniform(k_y, (B, L), jnp.float32, 0.0, 1.0)           # observed

    loss, ihat, a = soc_predictor_forward_batch(ms, rhorad, rrsoc, fs, y)
    jax.block_until_ready((loss, ihat, a))

    ref_loss, ref_ihat, ref_a = _reference_forward_batch(ms, rhorad, rrsoc, fs, y)
    assert jnp.allclose(a, ref_a, rtol=1e-5, atol=1e-6), "A mismatch"
    assert jnp.allclose(ihat, ref_ihat, rtol=1e-5, atol=1e-5), "Ihat mismatch"
    assert jnp.allclose(loss, ref_loss, rtol=1e-4, atol=1e-5), "loss mismatch"

    # Single-sample (module-faithful) path.
    loss0, ihat0 = soc_predictor_forward(ms[0], rhorad, rrsoc[0], fs, y[0])
    jax.block_until_ready((loss0, ihat0))
    assert jnp.allclose(loss0, ref_loss[0], rtol=1e-4, atol=1e-5), "single loss mismatch"
    assert jnp.allclose(ihat0, ref_ihat[0], rtol=1e-5, atol=1e-5), "single Ihat mismatch"

    print("KERNEL_OK")
</pallas_src>

<mosaic_0001>
module attributes {stable_mosaic.version = 11 : i64} {
  func.func @_soc_batch_kernel(%arg0: i32, %arg1: memref<8x24xf32, #tpu.memory_space<vmem>>, %arg2: memref<8x24xf32, #tpu.memory_space<vmem>>, %arg3: memref<24x384xf32, #tpu.memory_space<vmem>>, %arg4: memref<8x384xf32, #tpu.memory_space<vmem>>, %arg5: memref<8x1xf32, #tpu.memory_space<vmem>>, %arg6: memref<8x384xf32, #tpu.memory_space<vmem>>, %arg7: memref<8x24xf32, #tpu.memory_space<vmem>>) attributes {dimension_semantics = [#tpu.dimension_semantics<parallel>], iteration_bounds = array<i64: 2>, scalar_prefetch = 0 : i64, scratch_operands = 0 : i64, tpu.core_type = #tpu.core_type<tc>, window_params = [{transform_indices = @transform_0, window_bounds = array<i64: 8, 24>}, {transform_indices = @transform_1, window_bounds = array<i64: 8, 24>}, {pipeline_mode = #tpu.pipeline_mode<synchronous>, transform_indices = @transform_2, window_bounds = array<i64: 24, 384>}, {transform_indices = @transform_3, window_bounds = array<i64: 8, 384>}, {transform_indices = @transform_4, window_bounds = array<i64: 8, 1>}, {transform_indices = @transform_5, window_bounds = array<i64: 8, 384>}, {transform_indices = @transform_6, window_bounds = array<i64: 8, 24>}]} {
    %c0 = arith.constant 0 : index
    %c0_0 = arith.constant 0 : index
    %0 = vector.load %arg1[%c0, %c0_0] : memref<8x24xf32, #tpu.memory_space<vmem>>, vector<8x24xf32>
    %c0_1 = arith.constant 0 : index
    %c0_2 = arith.constant 0 : index
    %1 = vector.load %arg2[%c0_1, %c0_2] : memref<8x24xf32, #tpu.memory_space<vmem>>, vector<8x24xf32>
    %c0_3 = arith.constant 0 : index
    %c0_4 = arith.constant 0 : index
    %2 = vector.load %arg3[%c0_3, %c0_4] : memref<24x384xf32, #tpu.memory_space<vmem>>, vector<24x384xf32>
    %c0_5 = arith.constant 0 : index
    %c0_6 = arith.constant 0 : index
    %3 = vector.load %arg4[%c0_5, %c0_6] : memref<8x384xf32, #tpu.memory_space<vmem>>, vector<8x384xf32>
    %cst = arith.constant dense<0.000000e+00> : vector<8xf32>
    %4 = vector.multi_reduction <add>, %0, %cst [1] : vector<8x24xf32> to vector<8xf32>
    %5 = vector.shape_cast %4 : vector<8xf32> to vector<8x1xf32>
    %6 = tpu.reciprocal %5 : vector<8x1xf32> -> vector<8x1xf32>
    %7 = vector.broadcast %6 : vector<8x1xf32> to vector<8x24xf32>
    %8 = arith.mulf %0, %7 : vector<8x24xf32>
    %9 = arith.divf %0, %1 : vector<8x24xf32>
    %cst_7 = arith.constant dense<0.000000e+00> : vector<8xf32>
    %10 = vector.multi_reduction <add>, %9, %cst_7 [1] : vector<8x24xf32> to vector<8xf32>
    %11 = vector.shape_cast %10 : vector<8xf32> to vector<8x1xf32>
    %12 = tpu.reciprocal %11 : vector<8x1xf32> -> vector<8x1xf32>
    %13 = vector.broadcast %12 : vector<8x1xf32> to vector<8x24xf32>
    %14 = arith.mulf %9, %13 : vector<8x24xf32>
    %cst_8 = arith.constant dense<0.000000e+00> : vector<8x384xf32>
    %15 = tpu.matmul %14, %2, %cst_8 {dimension_numbers = #tpu.dot_dimension_numbers<[1], [0], [0], [1], [0, 0, 1, 1], [], []>} : vector<8x24xf32>, vector<24x384xf32>, vector<8x384xf32> -> vector<8x384xf32>
    %cst_9 = arith.constant 1.000000e-03 : f32
    %16 = vector.broadcast %cst_9 : f32 to vector<8x24xf32>
    %17 = arith.cmpf olt, %8, %16 : vector<8x24xf32>
    %cst_10 = arith.constant 1.000000e-03 : f32
    %18 = vector.broadcast %cst_10 : f32 to vector<8x24xf32>
    %19 = arith.subf %8, %18 : vector<8x24xf32>
    %20 = arith.mulf %19, %19 : vector<8x24xf32>
    %cst_11 = arith.constant 0.000000e+00 : f32
    %21 = vector.broadcast %cst_11 : f32 to vector<8x24xf32>
    %22 = arith.select %17, %20, %21 : vector<8x24xi1>, vector<8x24xf32>
    %cst_12 = arith.constant 9.990000e-01 : f32
    %23 = vector.broadcast %cst_12 : f32 to vector<8x24xf32>
    %24 = arith.cmpf ogt, %8, %23 : vector<8x24xf32>
    %cst_13 = arith.constant 1.000000e-03 : f32
    %25 = vector.broadcast %cst_13 : f32 to vector<8x24xf32>
    %26 = arith.addf %8, %25 : vector<8x24xf32>
    %cst_14 = arith.constant 1.000000e+00 : f32
    %27 = vector.broadcast %cst_14 : f32 to vector<8x24xf32>
    %28 = arith.subf %26, %27 : vector<8x24xf32>
    %29 = arith.mulf %28, %28 : vector<8x24xf32>
    %cst_15 = arith.constant 0.000000e+00 : f32
    %30 = vector.broadcast %cst_15 : f32 to vector<8x24xf32>
    %31 = arith.select %24, %29, %30 : vector<8x24xi1>, vector<8x24xf32>
    %32 = arith.addf %22, %31 : vector<8x24xf32>
    %cst_16 = arith.constant dense<0.000000e+00> : vector<8xf32>
    %33 = vector.multi_reduction <add>, %32, %cst_16 [1] : vector<8x24xf32> to vector<8xf32>
    %34 = vector.shape_cast %33 : vector<8xf32> to vector<8x1xf32>
    %35 = tpu.iota {dimensions = array<i32: 1>} : vector<8x384xi32>
    %c299_i32 = arith.constant 299 : i32
    %36 = vector.broadcast %c299_i32 : i32 to vector<8x384xi32>
    %37 = arith.cmpi slt, %35, %36 : vector<8x384xi32>
    %c383_i32 = arith.constant 383 : i32
    %38 = tpu.dynamic_rotate %15 by %c383_i32 dim 1 : vector<8x384xf32>, i32 -> vector<8x384xf32>
    %39 = arith.subf %38, %15 : vector<8x384xf32>
    %cst_17 = arith.constant 0.000000e+00 : f32
    %40 = vector.broadcast %cst_17 : f32 to vector<8x384xf32>
    %41 = arith.select %37, %39, %40 : vector<8x384xi1>, vector<8x384xf32>
    %c298_i32 = arith.constant 298 : i32
    %42 = vector.broadcast %c298_i32 : i32 to vector<8x384xi32>
    %43 = arith.cmpi slt, %35, %42 : vector<8x384xi32>
    %c383_i32_18 = arith.constant 383 : i32
    %44 = tpu.dynamic_rotate %41 by %c383_i32_18 dim 1 : vector<8x384xf32>, i32 -> vector<8x384xf32>
    %45 = arith.subf %44, %41 : vector<8x384xf32>
    %cst_19 = arith.constant 0.000000e+00 : f32
    %46 = vector.broadcast %cst_19 : f32 to vector<8x384xf32>
    %47 = arith.select %43, %45, %46 : vector<8x384xi1>, vector<8x384xf32>
    %c300_i32 = arith.constant 300 : i32
    %48 = vector.broadcast %c300_i32 : i32 to vector<8x384xi32>
    %49 = arith.cmpi slt, %35, %48 : vector<8x384xi32>
    %50 = arith.subf %3, %15 : vector<8x384xf32>
    %cst_20 = arith.constant 0.000000e+00 : f32
    %51 = vector.broadcast %cst_20 : f32 to vector<8x384xf32>
    %52 = arith.select %49, %50, %51 : vector<8x384xi1>, vector<8x384xf32>
    %53 = arith.mulf %41, %41 : vector<8x384xf32>
    %54 = arith.mulf %47, %47 : vector<8x384xf32>
    %55 = arith.addf %53, %54 : vector<8x384xf32>
    %cst_21 = arith.constant dense<0.000000e+00> : vector<8xf32>
    %56 = vector.multi_reduction <add>, %55, %cst_21 [1] : vector<8x384xf32> to vector<8xf32>
    %57 = vector.shape_cast %56 : vector<8xf32> to vector<8x1xf32>
    %58 = arith.mulf %52, %52 : vector<8x384xf32>
    %cst_22 = arith.constant dense<0.000000e+00> : vector<8xf32>
    %59 = vector.multi_reduction <add>, %58, %cst_22 [1] : vector<8x384xf32> to vector<8xf32>
    %60 = vector.shape_cast %59 : vector<8xf32> to vector<8x1xf32>
    %cst_23 = arith.constant 1.000000e+02 : f32
    %61 = vector.broadcast %cst_23 : f32 to vector<8x1xf32>
    %62 = arith.mulf %61, %57 : vector<8x1xf32>
    %cst_24 = arith.constant 1.000000e+00 : f32
    %63 = vector.broadcast %cst_24 : f32 to vector<8x1xf32>
    %64 = arith.addf %63, %62 : vector<8x1xf32>
    %cst_25 = arith.constant 1.000000e+02 : f32
    %65 = vector.broadcast %cst_25 : f32 to vector<8x1xf32>
    %66 = arith.mulf %65, %34 : vector<8x1xf32>
    %67 = arith.addf %64, %66 : vector<8x1xf32>
    %68 = arith.mulf %60, %67 : vector<8x1xf32>
    %c0_26 = arith.constant 0 : index
    %c0_27 = arith.constant 0 : index
    %69 = vector.load %arg5[%c0_26, %c0_27] : memref<8x1xf32, #tpu.memory_space<vmem>>, vector<8x1xf32>
    tpu.vector_store %arg5[%c0_26, %c0_27], %68 {strides = array<i32>} : memref<8x1xf32, #tpu.memory_space<vmem>>, vector<8x1xf32>,
    %c0_28 = arith.constant 0 : index
    %c0_29 = arith.constant 0 : index
    %70 = vector.load %arg6[%c0_28, %c0_29] : memref<8x384xf32, #tpu.memory_space<vmem>>, vector<8x384xf32>
    tpu.vector_store %arg6[%c0_28, %c0_29], %15 {strides = array<i32>} : memref<8x384xf32, #tpu.memory_space<vmem>>, vector<8x384xf32>,
    %c0_30 = arith.constant 0 : index
    %c0_31 = arith.constant 0 : index
    %71 = vector.load %arg7[%c0_30, %c0_31] : memref<8x24xf32, #tpu.memory_space<vmem>>, vector<8x24xf32>
    tpu.vector_store %arg7[%c0_30, %c0_31], %14 {strides = array<i32>} : memref<8x24xf32, #tpu.memory_space<vmem>>, vector<8x24xf32>,
    return
  }
  func.func @transform_0(%arg0: i32) -> (i32, i32) {
    %c0_i32 = arith.constant 0 : i32
    %c0_i32_0 = arith.constant 0 : i32
    return %arg0, %c0_i32 : i32, i32
  }
  func.func @transform_1(%arg0: i32) -> (i32, i32) {
    %c0_i32 = arith.constant 0 : i32
    %c0_i32_0 = arith.constant 0 : i32
    return %arg0, %c0_i32 : i32, i32
  }
  func.func @transform_2(%arg0: i32) -> (i32, i32) {
    %c0_i32 = arith.constant 0 : i32
    %c0_i32_0 = arith.constant 0 : i32
    %c0_i32_1 = arith.constant 0 : i32
    return %c0_i32, %c0_i32_0 : i32, i32
  }
  func.func @transform_3(%arg0: i32) -> (i32, i32) {
    %c0_i32 = arith.constant 0 : i32
    %c0_i32_0 = arith.constant 0 : i32
    return %arg0, %c0_i32 : i32, i32
  }
  func.func @transform_4(%arg0: i32) -> (i32, i32) {
    %c0_i32 = arith.constant 0 : i32
    %c0_i32_0 = arith.constant 0 : i32
    return %arg0, %c0_i32 : i32, i32
  }
  func.func @transform_5(%arg0: i32) -> (i32, i32) {
    %c0_i32 = arith.constant 0 : i32
    %c0_i32_0 = arith.constant 0 : i32
    return %arg0, %c0_i32 : i32, i32
  }
  func.func @transform_6(%arg0: i32) -> (i32, i32) {
    %c0_i32 = arith.constant 0 : i32
    %c0_i32_0 = arith.constant 0 : i32
    return %arg0, %c0_i32 : i32, i32
  }
}

</mosaic_0001>

<bundles_post_ra>
// kernel: tpu_custom_call.1
= control target key start
LH: loop header
LB: loop body
LE: loop exit
PB: predicated region body
PF: predicated region fallthrough
CT: control target
= control target key end

     0   :  { %s1624_s0 = inlined_call_operand.hbm [shape: f32[16,24], index: 0, kind: input, shape index: {}]   ;;  %s1625_s1 = inlined_call_operand.hbm [shape: f32[16,24], index: 1, kind: input, shape index: {}]   ;;  %s1626_s2 = inlined_call_operand.hbm [shape: f32[24,384], index: 2, kind: input, shape index: {}]   ;;  %s1627_s3 = inlined_call_operand.hbm [shape: f32[16,384], index: 3, kind: input, shape index: {}]   ;;  %s1628_s4 = inlined_call_operand.vmem [shape: f32[16,1], index: 4, kind: output, shape index: {0}]   ;;  %s1629_s5 = inlined_call_operand.hbm [shape: f32[16,384], index: 5, kind: output, shape index: {1}]   ;;  %s1630_s6 = inlined_call_operand.hbm [shape: f32[16,24], index: 6, kind: output, shape index: {2}]  }
   0x1   :  { %1641 = sst [smem:[#allocation22_spill]] %s1624_s0 }
   0x2   :  { %1642 = sst [smem:[#allocation23_spill]] %s1626_s2 }
   0x3   :  { %12 = vsyncpa [#allocation3], 0 }
   0x4   :  { %14 = vsyncpa [#allocation3 + $0x1], 0 }
   0x5   :  { %15 = vsyncpa [#allocation6], 0 }
   0x6   :  { %17 = vsyncpa [#allocation6 + $0x1], 0 }
   0x7   :  { %18 = vsyncpa [#allocation9], 0 }
   0x8   :  { %20 = vsyncpa [#allocation9 + $0x1], 0 }
   0x9   :  { %21 = vsyncpa [#allocation4], 0 }
   0xa   :  { %23 = vsyncpa [#allocation4 + $0x1], 0 }
   0xb   :  { %24 = vsyncpa [#allocation12], 0 }
   0xc   :  { %26 = vsyncpa [#allocation12 + $0x1], 0  ;;  %s1272_s21 = smov 0   ;;  %s1274_s22 = smov 0  }
   0xd   :  { %s1276_s23 = smov 0   ;;  %s1278_s24 = smov 0  }
   0xe LB: > { %1643 = sst [smem:[#allocation19_spill]] %s1219_s23  ;;  %s1293_s25 = sadd.s32 4294967295, %s1223_s24   ;;  %s1223_s24 = sphi %s1278_s24, %s1666_s24   ;;  %s1219_s23 = sphi %s1276_s23, %s1668_s23   ;;  %s1215_s22 = sphi %s1274_s22, %s1670_s22   ;;  %s1211_s21 = sphi %s1272_s21, %s1669_s21  }
   0xf   : > { %s863_s26 = sadd.s32 4294967294, %s1223_s24   ;;  %p52_p0 = scmp.ne.s32.totalorder %s1215_s22, %s1211_s21 }
  0x10   : > { %p1631_p1 = scmp.eq.s32.totalorder %s1293_s25, 0  ;;  %p181_p3 = scmp.eq.s32.totalorder %s863_s26, 1 }
  0x11   : > { %p864_p5 = scmp.ge.s32.totalorder %s1223_s24, 1  ;;  %p214_p7 = scmp.lt.s32.totalorder %s1223_s24, 3 }
  0x12   : > { %p1302_p4 = por %p1631_p1, %p52_p0  ;;  %p1307_p6 = por %p181_p3, %p52_p0 }
  0x13   : > { %p1312_p8 = pnand %p864_p5, %p214_p7  ;;  %s1225_s30 = smov [#allocation7]  }
  0x14   : > { %s1644_s27 = scalar_select %p1302_p4, 1, 0 }
  0x15   : > { %s1645_s28 = scalar_select %p1307_p6, 1, 0 }
  0x16   : > { %s1646_s29 = scalar_select %p1312_p8, 1, 0 }
  0x17   : > { %s226_s7 = sshll.u32 %s1225_s30, 4  ;;  %p925_p9 = pneg %p1312_p8  ;;  %s1316_s7 = int_to_ptr.vmem [resolvable:$true] %s226_s7 }
  0x18   : > { %s1328_s9 = sadd.s32 1, %s1223_s24   ;;  %s39_s10 = sadd.s32 1, %s1219_s23 }
  0x19   : > { %p1323_p11 = pnand %p925_p9, %p1631_p1  ;;  %1648 = sst [smem:[#allocation20_spill]] %s1328_s9 }
  0x1a   : > { %s36_s11 = ssub.s32 %s1223_s24, %s1328_s9  ;;  %s1649_s2 = sld [smem:[#allocation23_spill]] }
  0x1b   : > { %p997_p13 = pneg %p1323_p11 }
  0x20   : > { %s995_s14 = scalar_lea.hbm %s1649_s2, 1152 }
  0x21   : > { %p996_p12 = scmp.ne.s32.totalorder %s1649_s2, %s995_s14  ;;  %p1002_p5 = scmp.lt.u32.totalorder %s995_s14, %s1649_s2 }
  0x23   : > { %p998_p0 = pnand %p997_p13, %p996_p12 }
  0x25   : > { %p999_p3 = pneg %p998_p0 }
  0x27   : > { %p1004_p7 = pnand %p1002_p5, %p999_p3 }
  0x29   : > { %1007 = shalt.err (!%p1004_p7)
}
  0x2a   : > { %s1008_s19 = scalar_lea.vmem %s1316_s7, 1152  ;;  %p1016_p2 = scmp.lt.s32.totalorder %s1316_s7, %s1316_s7 }
  0x2b   : > { %p1009_p9 = scmp.ne.s32.totalorder %s1316_s7, %s1008_s19  ;;  %p1017_p6 = scmp.lt.s32.totalorder %s1008_s19, %s1008_s19 }
  0x2d   : > { %p1011_p10 = pnand %p1009_p9, %p997_p13  ;;  %p1018_p4 = por %p1017_p6, %p1016_p2 }
  0x2f   : > { %p1012_p1 = pneg %p1011_p10 }
  0x31   : > { %p1019_p8 = pnand %p1018_p4, %p1012_p1 }
  0x33   : > { %1022 = shalt.err (!%p1019_p8)
}
  0x34   : > { %s1226_s20 = smov 384   ;;  %s1227_s26 = smov 24  }
  0x35   : > { %928 = dma.hbm_to_vmem [thread:$0]  (!%p1323_p11), %s1649_s2, 1152, %s1316_s7, [#allocation6], %s1226_s20, %s1226_s20, %s1227_s26  }
  0x36   : > { %p37_p2 = scmp.eq.s32.totalorder %s36_s11, 0  ;;  %p46_p1 = scmp.ne.s32.totalorder %s1219_s23, %s1215_s22 }
  0x37   : > { %p47_p4 = scmp.eq.s32.totalorder %s1223_s24, 0  ;;  %p947_p6 = scmp.lt.s32.totalorder %s1223_s24, 2 }
  0x38   : > { %s1359_s13 = scalar_select %p37_p2, %s1219_s23, %s39_s10  }
  0x39   : > { %p48_p8 = por %p47_p4, %p46_p1  ;;  %p1651_p10 = scmp.eq.s32.totalorder %s1293_s25, 1 }
  0x3a   : > { %1650 = sst [smem:[#allocation21_spill]] %s1359_s13  ;;  %s1368_s15 = sand.u32 1, %s1219_s23  }
  0x3b   : > { %p1363_p12 = por %p1651_p10, %p46_p1  ;;  %s868_s8 = sshll.u32 %s1223_s24, 7 }
  0x3c   : > { %s1634_s16 = sshll.u32 %s1368_s15, 3  ;;  %s1653_s0 = sld [smem:[#allocation22_spill]] }
  0x3d   : > { %s1652_s14 = scalar_select %p1363_p12, 1, 0 }
  0x3e   : > { %s244_s10 = scalar_lea.vmem [#allocation2], %s1634_s16  ;;  %p1379_p11 = pnand %p947_p6, %p48_p8 }
  0x3f   : > { %s251_s18 = sshll.u32 %s244_s10, 4  ;;  %s1388_s30 = scalar_lea.hbm %s1625_s1, %s868_s8  ;;  %s1383_s18 = int_to_ptr.vmem [resolvable:$true] %s251_s18 }
  0x40   : > { %s1654_s19 = scalar_select %p1379_p11, 1, 0 }
  0x41   : > { %s241_s12 = scalar_lea.sflag [#allocation3], %s1368_s15  ;;  %p1395_p0 = pneg %p1379_p11 }
  0x42   : > { %s1375_s17 = scalar_lea.hbm %s1653_s0, %s868_s8  ;;  %s1028_s2 = scalar_lea.hbm %s1653_s0, 256 }
  0x43   : > { %s1023_s7 = scalar_lea.hbm %s1375_s17, 128  ;;  %p1029_p7 = scmp.lt.u32.totalorder %s1375_s17, %s1653_s0 }
  0x44   : > { %p1024_p13 = scmp.ne.s32.totalorder %s1375_s17, %s1023_s7  ;;  %p1030_p9 = scmp.lt.u32.totalorder %s1028_s2, %s1023_s7 }
  0x45   : > { %p1032_p1 = scmp.lt.u32.totalorder %s1023_s7, %s1375_s17 }
  0x46   : > { %p1026_p3 = pnand %p1395_p0, %p1024_p13  ;;  %p1031_p2 = por %p1030_p9, %p1029_p7 }
  0x48   : > { %p1027_p5 = pneg %p1026_p3  ;;  %p1033_p4 = por %p1032_p1, %p1031_p2 }
  0x4a   : > { %p1034_p6 = pnand %p1033_p4, %p1027_p5 }
  0x4c   : > { %1037 = shalt.err (!%p1034_p6)
}
  0x4d   : > { %s1038_s8 = scalar_lea.vmem %s1383_s18, 128  ;;  %s1228_s16 = smov [#allocation2]  }
  0x4e   : > { %p1039_p8 = scmp.ne.s32.totalorder %s1383_s18, %s1038_s8  ;;  %s1043_s26 = sshll.u32 %s1228_s16, 4  ;;  %s1044_s26 = int_to_ptr.vmem [resolvable:$false] %s1043_s26 }
  0x4f   : > { %s1045_s13 = scalar_lea.vmem %s1044_s26, 256  ;;  %p1046_p3 = scmp.lt.s32.totalorder %s1383_s18, %s1044_s26 }
  0x50   : > { %p1041_p10 = pnand %p1039_p8, %p1395_p0  ;;  %p1047_p12 = scmp.lt.s32.totalorder %s1045_s13, %s1038_s8 }
  0x52   : > { %p1042_p13 = pneg %p1041_p10  ;;  %p1048_p7 = por %p1047_p12, %p1046_p3 }
  0x54   : > { %p1049_p9 = pnand %p1048_p7, %p1042_p13 }
  0x56   : > { %1052 = shalt.err (!%p1049_p9)
}
  0x57   : > { %932 = dma.hbm_to_vmem [thread:$0]  (!%p1379_p11), %s1375_s17, 128, %s1383_s18, %s241_s12  }
  0x58   : > { %s258_s2 = sand.u32 1, %s1223_s24   ;;  %s1656_s7 = sshll.u32 %s1368_s15, 3 }
  0x59   : > { %s262_s10 = scalar_lea.vmem [#allocation5], %s1656_s7  ;;  %s259_s8 = scalar_lea.sflag [#allocation6], %s258_s2 }
  0x5a   : > { %s269_s20 = sshll.u32 %s262_s10, 4  ;;  %s1053_s16 = scalar_lea.hbm %s1388_s30, 128  ;;  %s270_s20 = int_to_ptr.vmem [resolvable:$true] %s269_s20 }
  0x5b   : > { %p1054_p12 = scmp.ne.s32.totalorder %s1388_s30, %s1053_s16  ;;  %s1058_s0 = scalar_lea.hbm %s1625_s1, 256 }
  0x5c   : > { %p1059_p1 = scmp.lt.u32.totalorder %s1388_s30, %s1625_s1  ;;  %p1060_p4 = scmp.lt.u32.totalorder %s1058_s0, %s1053_s16 }
  0x5d   : > { %p1056_p5 = pnand %p1054_p12, %p1395_p0  ;;  %p1062_p8 = scmp.lt.u32.totalorder %s1053_s16, %s1388_s30 }
  0x5e   : > { %p1061_p6 = por %p1060_p4, %p1059_p1 }
  0x5f   : > { %p1057_p2 = pneg %p1056_p5 }
  0x60   : > { %p1063_p10 = por %p1062_p8, %p1061_p6 }
  0x62   : > { %p1064_p13 = pnand %p1063_p10, %p1057_p2 }
  0x64   : > { %1067 = shalt.err (!%p1064_p13)
}
  0x65   : > { %s1068_s17 = scalar_lea.vmem %s270_s20, 128  ;;  %s1229_s18 = smov [#allocation5]  }
  0x66   : > { %p1069_p3 = scmp.ne.s32.totalorder %s270_s20, %s1068_s17  ;;  %s1073_s12 = sshll.u32 %s1229_s18, 4  ;;  %s1074_s12 = int_to_ptr.vmem [resolvable:$false] %s1073_s12 }
  0x67   : > { %s1075_s2 = scalar_lea.vmem %s1074_s12, 256  ;;  %p1076_p12 = scmp.lt.s32.totalorder %s270_s20, %s1074_s12 }
  0x68   : > { %p1071_p7 = pnand %p1069_p3, %p1395_p0  ;;  %p1077_p5 = scmp.lt.s32.totalorder %s1075_s2, %s1068_s17 }
  0x6a   : > { %p1072_p9 = pneg %p1071_p7  ;;  %p1078_p11 = por %p1077_p5, %p1076_p12 }
  0x6c   : > { %p1079_p1 = pnand %p1078_p11, %p1072_p9 }
  0x6e   : > { %1082 = shalt.err (!%p1079_p1)
}
  0x6f   : > { %p1657_p4 = scmp.ne.s32.totalorder %s1654_s19, 0  ;;  %s907_s0 = smul.u32 24, %s1368_s15 }
  0x70   : > { %s908_s23 = smul.u32 384, %s1223_s24  ;;  %s277_s13 = scalar_lea.sflag [#allocation9], %s1368_s15 }
  0x71   : > { %935 = dma.hbm_to_vmem [thread:$0]  (!%p1657_p4), %s1388_s30, 128, %s270_s20, %s259_s8  }
  0x72   : > { %s1443_s10 = scalar_lea.hbm %s1627_s3, %s908_s23  ;;  %s280_s16 = scalar_lea.vmem [#allocation8], %s907_s0 }
  0x73   : > { %s288_s26 = sshll.u32 %s280_s16, 4  ;;  %s1083_s17 = scalar_lea.hbm %s1443_s10, 384  ;;  %s289_s26 = int_to_ptr.vmem [resolvable:$true] %s288_s26 }
  0x74   : > { %p1084_p11 = scmp.ne.s32.totalorder %s1443_s10, %s1083_s17  ;;  %s1088_s8 = scalar_lea.hbm %s1627_s3, 768 }
  0x75   : > { %p1089_p8 = scmp.lt.u32.totalorder %s1443_s10, %s1627_s3  ;;  %p1090_p10 = scmp.lt.u32.totalorder %s1088_s8, %s1083_s17 }
  0x76   : > { %p1086_p2 = pnand %p1084_p11, %p1395_p0  ;;  %p1092_p3 = scmp.lt.u32.totalorder %s1083_s17, %s1443_s10 }
  0x77   : > { %p1091_p13 = por %p1090_p10, %p1089_p8 }
  0x78   : > { %p1087_p6 = pneg %p1086_p2 }
  0x79   : > { %p1093_p7 = por %p1092_p3, %p1091_p13 }
  0x7b   : > { %p1094_p9 = pnand %p1093_p7, %p1087_p6 }
  0x7d   : > { %1097 = shalt.err (!%p1094_p9)
}
  0x7e   : > { %s1098_s15 = scalar_lea.vmem %s289_s26, 384  ;;  %s1230_s2 = smov [#allocation8]  }
  0x7f   : > { %p1099_p12 = scmp.ne.s32.totalorder %s289_s26, %s1098_s15  ;;  %s1103_s0 = sshll.u32 %s1230_s2, 4  ;;  %s1104_s0 = int_to_ptr.vmem [resolvable:$false] %s1103_s0 }
  0x80   : > { %s1105_s23 = scalar_lea.vmem %s1104_s0, 768  ;;  %p1106_p11 = scmp.lt.s32.totalorder %s289_s26, %s1104_s0 }
  0x81   : > { %p1101_p5 = pnand %p1099_p12, %p1395_p0  ;;  %p1107_p2 = scmp.lt.s32.totalorder %s1105_s23, %s1098_s15 }
  0x83   : > { %p1102_p1 = pneg %p1101_p5  ;;  %p1108_p4 = por %p1107_p2, %p1106_p11 }
  0x85   : > { %p1109_p8 = pnand %p1108_p4, %p1102_p1 }
  0x87   : > { %1112 = shalt.err (!%p1109_p8)
}
  0x88   : > { %p1658_p10 = scmp.ne.s32.totalorder %s1654_s19, 0  ;;  %p1659_p6 = scmp.ne.s32.totalorder %s1646_s29, 0 }
  0x89   : > { %s1466_s11 = sand.u32 (!%p1659_p6), 1, %s1215_s22   ;;  %p1660_p0 = scmp.ne.s32.totalorder (!%p1659_p6), %s1644_s27, 0 }
  0x8a   : > { %938 = dma.hbm_to_vmem [thread:$0]  (!%p1658_p10), %s1443_s10, 384, %s289_s26, %s277_s13  }
  0x8b   : > { %297 = sbr.rel (%p1659_p6) target bundleno = 946 (0x3b2), region = 36  ;;  %s1469_s9 = sshll.u32 (!%p1659_p6), %s1466_s11, 3 }
  0x8c   : > { %s300_s7 = scalar_lea.sflag (!%p1659_p6), [#allocation3], %s1466_s11  ;;  %s303_s16 = scalar_lea.vmem (!%p1659_p6), [#allocation2], %s1469_s9 }
  0x92   : > { %1186 = dma.done.wait (%p1660_p0), %s300_s7, 128  }
  0x93   : > { %1188 = vsyncadd (%p1660_p0), %s300_s7, 4294967168  ;;  %s308_s29 = sand.u32 1, %s1293_s25   ;;  %s312_s10 = scalar_lea.vmem [#allocation5], %s1469_s9 }
  0x94   : > { %s309_s19 = scalar_lea.sflag [#allocation6], %s308_s29 }
  0x95   : > { %1190 = dma.done.wait (%p1660_p0), %s309_s19, 128  }
  0x96   : > { %1192 = vsyncadd (%p1660_p0), %s309_s19, 4294967168  ;;  %p1661_p4 = scmp.eq.s32.totalorder %s1293_s25, 0 }
  0x98   : > { %1194 = dma.done.wait (%p1661_p4), [#allocation6], 1152   ;;  %p1662_p13 = pmov %p1661_p4 }
  0x99   : > { %s909_s26 = smul.u32 24, %s1466_s11  ;;  %s322_s13 = scalar_lea.sflag [#allocation9], %s1466_s11 }
  0x9a   : > { %1196 = vsyncadd (%p1662_p13), [#allocation6], 4294966144 }
  0x9b   : > { %s1491_s17 = scalar_lea.vmem [#allocation8], %s909_s26 }
  0x9c   : > { %1198 = dma.done.wait (%p1660_p0), %s322_s13, 384  }
  0x9d   : > { %1200 = vsyncadd (%p1660_p0), %s322_s13, 4294966912  ;;  %v378_v0 = vld [vmem:[%s312_s10] sm:$0xff]  ;;  %v1497_v1 = vld [vmem:[%s303_s16] sm:$0xff]  ;;  %vm391_vm0 = vcmask 195584   ;;  %v1231_v9 = vmov 0.0|0.0   ;;  %v1232_v13 = vmov 0.0   ;;  %v561_v22 = vlaneseq }
  0x9e   : > { %989 = vrcp.f32 %v378_v0  ;;  %v380_v5 = vld [vmem:[#allocation7 + $0x8] sm:$0xff]  ;;  %v383_v6 = vld [vmem:[#allocation7 + $0x20] sm:$0xff]  ;;  %904 = vmatprep.subr.bf16.mxu1 %v1231_v9  ;;  %v382_v10 = vld [vmem:[#allocation7 + $0x18] sm:$0xff]  ;;  %471 = vmatprep.mubr.f32.mxu0 %v1232_v13  ;;  %vm1233_vm1 = vmmov 0   ;;  %s372_s27 = scalar_lea.vmem [#allocation11], %s1469_s9  ;;  %s1518_s30 = scalar_lea.vmem [#allocation10], %s909_s26 }
  0x9f   : > { %v379_v7 = vld [vmem:[#allocation7] sm:$0xff]  ;;  %v900_v8 = vpack.c.bf16 %v383_v6, %v380_v5  ;;  %v381_v11 = vld [vmem:[#allocation7 + $0x10] sm:$0xff]  ;;  %v384_v12 = vld [vmem:[#allocation7 + $0x28] sm:$0xff]  ;;  %897 = vmatprep.mubr.msk.f32.mxu1 %vm1233_vm1, %v1232_v13  ;;  %v1507_v23 = vand.u32 127, %v561_v22  ;;  %s1234_s20 = smov 127   ;;  %v392_v41 = vsel %vm391_vm0, %v1497_v1, 0.0 }
  0xa0   : > { %v902_v14 = vpack.c.bf16 %v382_v10, %v379_v7  ;;  %v905_v15 = vpack.c.bf16 %v384_v12, %v381_v11  ;;  %v386_v16 = vld [vmem:[#allocation7 + $0x38] sm:$0xff]  ;;  %v385_v17 = vld [vmem:[#allocation7 + $0x30] sm:$0xff]  ;;  %v387_v18 = vld [vmem:[#allocation7 + $0x40] sm:$0xff]  ;;  %s910_s8 = smul.u32 384, %s1293_s25  ;;  %s669_s18 = sshll.u32 %s1518_s30, 4  ;;  %s670_s18 = int_to_ptr.vmem [resolvable:$true] %s669_s18 }
  0xa1   : > { %901 = vmatprep.subr.bf16.mxu0 %v900_v8  ;;  %v1510_v24 = vadd.s32 256, %v1507_v23  ;;  %v388_v25 = vld [vmem:[%s1491_s17] sm:$0xff]  ;;  %v390_v26 = vld [vmem:[%s1491_s17 + $0x10] sm:$0xff]  ;;  %v389_v27 = vld [vmem:[%s1491_s17 + $0x8] sm:$0xff]  ;;  %vm574_vm3 = vcmp.lt.s32.totalorder %v1507_v23, 127  ;;  %s884_s12 = sshll.u32 %s1293_s25, 7 }
  0xa2   : > { %903 = vmatpush1.bf16.msra.mxu0 %v902_v14  ;;  %906 = vmatpush3.bf16.msra.mxu1 %v905_v15  ;;  %s1554_s0 = scalar_lea.hbm %s1629_s5, %s910_s8  ;;  %s647_s23 = scalar_lea.sflag [#allocation4], %s1466_s11 }
  0xa3   : > { %411 = vmatprep.subr.mxu0 %v386_v16  ;;  %895 = vmatprep.subr.mxu1 %v1232_v13  ;;  %vm604_vm2 = vcmp.lt.s32.totalorder %v1510_v24, 300  ;;  %vm567_vm4 = vcmp.lt.s32.totalorder %v1510_v24, 299  ;;  %vm586_vm7 = vcmp.lt.s32.totalorder %v1510_v24, 298  ;;  %s1113_s7 = scalar_lea.vmem %s670_s18, 384  ;;  %p1663_p7 = scmp.ne.s32.totalorder %s1652_s14, 0 }
  0xa4   : > { %p1114_p3 = scmp.ne.s32.totalorder %s670_s18, %s1113_s7  ;;  %s1235_s16 = smov [#allocation10]  }
  0xa5   : > { %s1117_s29 = sshll.u32 %s1235_s16, 4  ;;  %s1118_s29 = int_to_ptr.vmem [resolvable:$false] %s1117_s29 }
  0xa6   : > { %412 = vmatpush1.msra.mxu0 %v385_v17  ;;  %896 = vmatpush3.msra.mxu1 %v387_v18  ;;  %p1115_p9 = pnand %p1114_p3, %p1663_p7  ;;  %s1119_s19 = scalar_lea.vmem %s1118_s29, 768 }
  0xa7   : > { %p1120_p5 = scmp.lt.s32.totalorder %s670_s18, %s1118_s29  ;;  %p1121_p1 = scmp.lt.s32.totalorder %s1119_s19, %s1113_s7 }
  0xa8   : > { %v990_v2 = vpop.eup %989  ;;  %p1116_p12 = pneg %p1115_p9 }
  0xa9   : > { %v398_v3 = vmul.f32 %v990_v2, %v1497_v1  ;;  %p1122_p11 = por %p1121_p1, %p1120_p5 }
  0xab   : > { %v399_v4 = vsel %vm391_vm0, %v398_v3, 0.0  ;;  %p1123_p2 = pnand %p1122_p11, %p1116_p12 }
  0xac   : > { %400 = vadd.xlane.f32.xlu0 %v399_v4 }
 0x139   : > { %v401_v19 = vpop.xlane.xlu0 %400 }
 0x13a   : > { %991 = vrcp.f32 %v401_v19 }
 0x144   : > { %v992_v20 = vpop.eup %991 }
 0x145   : > { %v403_v21 = vmul.f32 %v992_v20, %v398_v3 }
 0x147   : > { %878 = vmatmul.mubr.msk.f32.vlgmr.msra.gmra.mrb[0].mxu0 %vm391_vm0, %v403_v21  ;;  %898 = vmatmul.mubr.msk.f32.vlgmr.msra.gmra.mrb[0].mxu1 %vm391_vm0, %v403_v21  ;;  %641 = vst.msk [vmem:[%s372_s27] sm:$0xff] %vm391_vm0, %v403_v21 }
 0x21a   : > { %v473_v28 = vpop.f32.mrb[0].mxu0  ;;  %v544_v29 = vpop.f32.mrb[0].mxu1 }
 0x21b   : > { %v605_v30 = vsub.f32 %v388_v25, %v473_v28  ;;  %638 = vst [vmem:[%s1518_s30] sm:$0xff] %v473_v28  ;;  %640 = vst [vmem:[%s1518_s30 + $0x10] sm:$0xff] %v544_v29  ;;  %572 = vrot.lane.b32.xlu1 %v544_v29, %s1234_s20  ;;  %v899_v31 = vpop.f32.mrb[1].mxu1  ;;  %568 = vrot.lane.b32.xlu0 %v473_v28, %s1234_s20  ;;  %v475_v32 = vpop.f32.mrb[1].mxu0  ;;  %v607_v33 = vsub.f32 %v390_v26, %v544_v29 }
 0x21c   : > { %v606_v34 = vsub.f32 %v389_v27, %v475_v32  ;;  %639 = vst [vmem:[%s1518_s30 + $0x8] sm:$0xff] %v475_v32 }
 0x21d   : > { %v610_v35 = vsel %vm604_vm2, %v607_v33, 0.0  ;;  %v624_v36 = vmul.f32 %v605_v30, %v605_v30 }
 0x21e   : > { %v625_v37 = vmul.f32 %v606_v34, %v606_v34  ;;  %v626_v38 = vmul.f32 %v610_v35, %v610_v35 }
 0x21f   : > { %570 = vrot.lane.b32.xlu1 %v475_v32, %s1234_s20 }
 0x220   : > { %v627_v39 = vadd.f32 %v625_v37, %v624_v36 }
 0x222   : > { %v628_v40 = vadd.f32 %v627_v39, %v626_v38 }
 0x243   : > { %393 = vadd.xlane.f32.xlu1 %v392_v41 }
 0x28d   : > { %v573_v42 = vpop.permute.xlu1 %572  ;;  %v569_v43 = vpop.permute.xlu0 %568 }
 0x28e   : > { %v577_v48 = vsel %vm574_vm3, %v573_v42, %v569_v43 }
 0x28f   : > { %v580_v50 = vsub.f32 %v577_v48, %v544_v29 }
 0x291   : > { %v571_v44 = vpop.permute.xlu1 %570  ;;  %v583_v51 = vsel %vm567_vm4, %v580_v50, 0.0 }
 0x292   : > { %v576_v45 = vsel %vm574_vm3, %v569_v43, %v571_v44  ;;  %v575_v47 = vsel %vm574_vm3, %v571_v44, %v573_v42  ;;  %v613_v14 = vmul.f32 %v583_v51, %v583_v51 }
 0x293   : > { %v578_v46 = vsub.f32 %v576_v45, %v473_v28  ;;  %v579_v49 = vsub.f32 %v575_v47, %v475_v32 }
 0x295   : > { %587 = vrot.lane.b32.xlu0 %v578_v46, %s1234_s20  ;;  %v611_v10 = vmul.f32 %v578_v46, %v578_v46  ;;  %v612_v12 = vmul.f32 %v579_v49, %v579_v49 }
 0x299   : > { %589 = vrot.lane.b32.xlu0 %v579_v49, %s1234_s20 }
 0x29d   : > { %591 = vrot.lane.b32.xlu0 %v583_v51, %s1234_s20 }
 0x2d0   : > { %v394_v52 = vpop.xlane.xlu1 %393 }
 0x2d1   : > { %993 = vrcp.f32 %v394_v52 }
 0x2db   : > { %v994_v53 = vpop.eup %993 }
 0x2dc   : > { %v396_v54 = vmul.f32 %v994_v53, %v1497_v1 }
 0x2de   : > { %v880_v55 = vadd.f32 -0.001, %v396_v54  ;;  %v553_v56 = vadd.f32 0.001, %v396_v54  ;;  %vm548_vm5 = vcmp.lt.f32.partialorder %v396_v54, 0.001 }
 0x2df   : > { %vm552_vm6 = vcmp.gt.f32.partialorder %v396_v54, 0.999 }
 0x2e0   : > { %v550_v57 = vmul.f32 %v880_v55, %v880_v55  ;;  %v881_v58 = vadd.f32 -1.0, %v553_v56 }
 0x2e2   : > { %v551_v59 = vsel %vm548_vm5, %v550_v57, 0.0  ;;  %v555_v60 = vmul.f32 %v881_v58, %v881_v58 }
 0x2e4   : > { %v556_v61 = vsel %vm552_vm6, %v555_v60, 0.0 }
 0x2e5   : > { %v557_v62 = vadd.f32 %v556_v61, %v551_v59 }
 0x2e7   : > { %v558_v63 = vsel %vm391_vm0, %v557_v62, 0.0 }
 0x2e8   : > { %559 = vadd.xlane.f32.xlu1 %v558_v63 }
 0x2ec   : > { %629 = vadd.xlane.f32.xlu1 %v628_v40 }
 0x307   : > { %v588_v0 = vpop.permute.xlu0 %587 }
 0x30b   : > { %v590_v2 = vpop.permute.xlu0 %589 }
 0x30c   : > { %v594_v3 = vsel %vm574_vm3, %v588_v0, %v590_v2 }
 0x30d   : > { %v596_v1 = vsub.f32 %v594_v3, %v578_v46 }
 0x30f   : > { %v592_v4 = vpop.permute.xlu0 %591  ;;  %v614_v7 = vmul.f32 %v596_v1, %v596_v1 }
 0x310   : > { %v593_v5 = vsel %vm574_vm3, %v590_v2, %v592_v4  ;;  %v595_v6 = vsel %vm574_vm3, %v592_v4, %v588_v0 }
 0x311   : > { %v597_v8 = vsub.f32 %v593_v5, %v579_v49  ;;  %v598_v9 = vsub.f32 %v595_v6, %v583_v51  ;;  %v617_v16 = vadd.f32 %v614_v7, %v611_v10 }
 0x313   : > { %v601_v11 = vsel %vm586_vm7, %v598_v9, 0.0  ;;  %v615_v13 = vmul.f32 %v597_v8, %v597_v8 }
 0x314   : > { %v616_v15 = vmul.f32 %v601_v11, %v601_v11 }
 0x315   : > { %v618_v17 = vadd.f32 %v615_v13, %v612_v12 }
 0x316   : > { %v619_v18 = vadd.f32 %v616_v15, %v613_v14 }
 0x317   : > { %v620_v19 = vadd.f32 %v618_v17, %v617_v16 }
 0x319   : > { %v621_v20 = vadd.f32 %v620_v19, %v619_v18 }
 0x31b   : > { %622 = vadd.xlane.f32.xlu0 %v621_v20 }
 0x31c   : > { %1126 = shalt.err (!%p1123_p2)
}
 0x31d   : > { %s1127_s10 = scalar_lea.hbm %s1554_s0, 384  ;;  %s1131_s17 = scalar_lea.hbm %s1629_s5, 768 }
 0x31e   : > { %p1128_p8 = scmp.ne.s32.totalorder %s1554_s0, %s1127_s10  ;;  %p1132_p0 = scmp.lt.u32.totalorder %s1554_s0, %s1629_s5 }
 0x31f   : > { %p1133_p4 = scmp.lt.u32.totalorder %s1131_s17, %s1127_s10  ;;  %p1135_p3 = scmp.lt.u32.totalorder %s1127_s10, %s1554_s0 }
 0x320   : > { %p1129_p10 = pnand %p1128_p8, %p1663_p7 }
 0x321   : > { %p1134_p13 = por %p1133_p4, %p1132_p0 }
 0x322   : > { %p1130_p6 = pneg %p1129_p10 }
 0x323   : > { %p1136_p9 = por %p1135_p3, %p1134_p13 }
 0x325   : > { %p1137_p12 = pnand %p1136_p9, %p1130_p6 }
 0x327   : > { %1140 = shalt.err (!%p1137_p12)
}
 0x328   : > { %921 = dma.vmem_to_hbm [thread:$0]  (%p1663_p7), %s670_s18, 384, %s1554_s0, %s647_s23  }
 0x329   : > { %s1579_s2 = scalar_lea.hbm %s1630_s6, %s884_s12  ;;  %s682_s7 = sshll.u32 %s372_s27, 4  ;;  %s683_s7 = int_to_ptr.vmem [resolvable:$true] %s682_s7 }
 0x32a   : > { %s652_s16 = scalar_lea.sflag [#allocation12], %s1466_s11  ;;  %s1141_s29 = scalar_lea.vmem %s683_s7, 128 }
 0x32b   : > { %p1142_p5 = scmp.ne.s32.totalorder %s683_s7, %s1141_s29  ;;  %s1236_s19 = smov [#allocation11]  }
 0x32c   : > { %s1145_s10 = sshll.u32 %s1236_s19, 4  ;;  %s1146_s10 = int_to_ptr.vmem [resolvable:$false] %s1145_s10 }
 0x32d   : > { %p1143_p1 = pnand %p1142_p5, %p1663_p7  ;;  %s1147_s26 = scalar_lea.vmem %s1146_s10, 256 }
 0x32e   : > { %p1148_p2 = scmp.lt.s32.totalorder %s683_s7, %s1146_s10  ;;  %p1149_p8 = scmp.lt.s32.totalorder %s1147_s26, %s1141_s29 }
 0x32f   : > { %p1144_p11 = pneg %p1143_p1 }
 0x330   : > { %p1150_p10 = por %p1149_p8, %p1148_p2 }
 0x332   : > { %p1151_p6 = pnand %p1150_p10, %p1144_p11 }
 0x334   : > { %1154 = shalt.err (!%p1151_p6)
}
 0x335   : > { %s1155_s11 = scalar_lea.hbm %s1579_s2, 128  ;;  %s1159_s18 = scalar_lea.hbm %s1630_s6, 256 }
 0x336   : > { %p1156_p0 = scmp.ne.s32.totalorder %s1579_s2, %s1155_s11  ;;  %p1160_p3 = scmp.lt.u32.totalorder %s1579_s2, %s1630_s6 }
 0x337   : > { %p1161_p9 = scmp.lt.u32.totalorder %s1159_s18, %s1155_s11  ;;  %p1163_p5 = scmp.lt.u32.totalorder %s1155_s11, %s1579_s2 }
 0x338   : > { %p1157_p4 = pnand %p1156_p0, %p1663_p7 }
 0x339   : > { %p1162_p12 = por %p1161_p9, %p1160_p3 }
 0x33a   : > { %p1158_p13 = pneg %p1157_p4 }
 0x33b   : > { %p1164_p1 = por %p1163_p5, %p1162_p12 }
 0x33d   : > { %p1165_p11 = pnand %p1164_p1, %p1158_p13 }
 0x33f   : > { %1168 = shalt.err (!%p1165_p11)
}
 0x340   : > { %922 = dma.vmem_to_hbm [thread:$0]  (%p1663_p7), %s683_s7, 128, %s1579_s2, %s652_s16   ;;  %vm636_vm8 = vcmask 7168  }
 0x341   : > { %p373_p2 = scmp.lt.s32.totalorder %s1293_s25, 1 }
 0x343   : > { %s1672_s25 = smov (!%p373_p2, %s1293_s25), 1 }
 0x344   : > { %s877_s23 = sshll.u32 %s1672_s25, 3 }
 0x345   : > { %s376_s30 = scalar_lea.vmem %s1628_s4, %s877_s23 }
 0x375   : > { %v560_v21 = vpop.xlane.xlu1 %559 }
 0x376   : > { %v633_v24 = vmul.f32 100.0, %v560_v21 }
 0x379   : > { %v630_v27 = vpop.xlane.xlu1 %629 }
 0x3a8   : > { %v623_v22 = vpop.xlane.xlu0 %622 }
 0x3a9   : > { %v631_v23 = vmul.f32 100.0, %v623_v22 }
 0x3ab   : > { %v632_v25 = vadd.f32 1.0, %v631_v23 }
 0x3ad   : > { %v634_v26 = vadd.f32 %v633_v24, %v632_v25 }
 0x3af   : > { %v635_v28 = vmul.f32 %v634_v26, %v630_v27 }
 0x3b1   : > { %637 = vst.msk [vmem:[%s376_s30] sm:$0xff] %vm636_vm8, %v635_v28 }
 0x3b2 PF: > { %s701_s14 = sand.u32 1, %s1211_s21   ;;  %p1664_p7 = scmp.ne.s32.totalorder %s1645_s28, 0 }
 0x3b3   : > { %p1665_p8 = scmp.ge.s32.totalorder %s1223_s24, 2  ;;  %s702_s20 = scalar_lea.sflag [#allocation4], %s701_s14 }
 0x3b5   : > { %p940_p10 = pnand %p1665_p8, %p1664_p7 }
 0x3b7   : > { %1202 = dma.done.wait (!%p940_p10), %s702_s20, 384  }
 0x3b8   : > { %1204 = vsyncadd (!%p940_p10), %s702_s20, 4294966912  ;;  %s711_s25 = scalar_lea.sflag [#allocation12], %s701_s14 }
 0x3b9   : > { %1206 = dma.done.wait (!%p940_p10), %s711_s25, 128  }
 0x3ba   : > { %1208 = vsyncadd (!%p940_p10), %s711_s25, 4294967168  ;;  %s1666_s24 = sld [smem:[#allocation20_spill]]  ;;  %s1667_s8 = sld [smem:[#allocation19_spill]] }
 0x3bb   : > { %s1668_s23 = sld [smem:[#allocation21_spill]]  ;;  %s1669_s21 = smov %s1215_s22 }
 0x3c0   : > { %p29_p6 = scmp.ge.s32.totalorder %s1666_s24, 4   ;;  %s1670_s22 = smov %s1667_s8 }
 0x3c2   :  { %31 = sbr.rel (!%p29_p6) target bundleno = 14 (0xe), region = 140 }
 0x3c9   :  { %716 = vsyncpa [#allocation3], 1 }
 0x3ca   :  { %718 = vsyncpa [#allocation3 + $0x1], 1 }
 0x3cb   :  { %719 = vsyncpa [#allocation6], 1 }
 0x3cc   :  { %721 = vsyncpa [#allocation6 + $0x1], 1 }
 0x3cd   :  { %722 = vsyncpa [#allocation9], 1 }
 0x3ce   :  { %724 = vsyncpa [#allocation9 + $0x1], 1 }
 0x3cf   :  { %725 = vsyncpa [#allocation4], 1 }
 0x3d0   :  { %727 = vsyncpa [#allocation4 + $0x1], 1 }
 0x3d1   :  { %728 = vsyncpa [#allocation12], 1 }
 0x3d2   :  { %730 = vsyncpa [#allocation12 + $0x1], 1 }

</bundles_post_ra>
